<compile_context>
chip_gen: v7x
topology: tpu7x:2x2x1
jax: 0.10.0
libtpu: 0.0.40
codegen_flags: <defaults>
</compile_context>

<pallas_src>
import functools

import jax
import jax.numpy as jnp
from jax.experimental import pallas as pl
from jax.experimental.pallas import tpu as pltpu

_MIB = 1024 * 1024


def _round_up(x, m):
    return (x + m - 1) // m * m


def _hw_vmem_bytes():
    """Physical VMEM per TensorCore (128 MiB on v5e/v6e, 64 MiB on v7x)."""
    try:
        cap = int(pltpu.get_tpu_info().vmem_capacity_bytes)
        if cap > 0:
            return cap
    except Exception:
        pass
    return 64 * _MIB  # conservative fallback, safe on every generation


def _vmem_estimate(tm, th, Ep, out_bytes):
    """Double-buffered in/out blocks + f32 accumulator + (tm, th) f32 intermediate."""
    dbuf = 2 * (
        tm * Ep * 2          # x tile (bf16)
        + Ep * th * 2        # W1 slab (bf16)
        + th * 4             # b1 slab (f32)
        + th * Ep * 2        # W2 slab (bf16)
        + Ep * 4             # b2 (f32)
        + tm * Ep * out_bytes  # output tile
    )
    return dbuf + tm * Ep * 4 + tm * th * 4


def _ffn_kernel(x_ref, w1_ref, b1_ref, w2_ref, b2_ref, o_ref, acc_ref):
    # x_ref:  (tm, Ep)  bf16 row tile of the flattened input
    # w1_ref: (Ep, th)  bf16 slab of first linear weight
    # b1_ref: (1, th)   f32  slab of first bias
    # w2_ref: (th, Ep)  bf16 slab of second linear weight
    # b2_ref: (1, Ep)   f32  second bias (used only at finalize)
    # o_ref:  (tm, Ep)  output row tile
    # acc_ref:(tm, Ep)  f32 accumulator scratch (resident across the H axis)
    h_idx = pl.program_id(1)

    @pl.when(h_idx == 0)
    def _init():
        acc_ref[...] = jnp.zeros_like(acc_ref)

    # First matmul slab on the MXU, f32 accumulation.
    h = jnp.dot(x_ref[...], w1_ref[...], preferred_element_type=jnp.float32)
    # Bias + ReLU in f32.
    h = jnp.maximum(h + b1_ref[...], 0.0)
    # Second matmul slab, accumulated into the f32 scratch.
    acc_ref[...] += jnp.dot(
        h.astype(w2_ref.dtype), w2_ref[...], preferred_element_type=jnp.float32
    )

    @pl.when(h_idx == pl.num_programs(1) - 1)
    def _finalize():
        o_ref[...] = (acc_ref[...] + b2_ref[...]).astype(o_ref.dtype)


def _apply_impl(x, w1p, b1p, w2p, b2p, *, th):
    """Traced under jit: shapes are concrete, so tile selection is trace-time."""
    B, T, E = x.shape
    M = B * T
    Ep, Hp = w1p.shape
    out_dtype = x.dtype
    out_bytes = jnp.dtype(out_dtype).itemsize

    vmem_cap = _hw_vmem_bytes()
    big_vmem = vmem_cap >= 100 * _MIB            # v5e/v6e (128 MiB) vs v7x (64 MiB)
    budget = min(vmem_cap - 8 * _MIB, 100 * _MIB)

    # ---- row tile: large enough to be MXU-bound (arithmetic intensity ~ tm) ----
    target_tm = 1024 if big_vmem else 512
    tm = min(target_tm, _round_up(M, 8))
    # v7x has 2 TensorCores: keep the "parallel" row axis splittable when M allows.
    if not big_vmem:
        while tm > 256 and _round_up(M, tm) // tm < 2:
            tm //= 2

    # ---- fit the VMEM budget: shrink th first (cheap), then tm (costs reuse) ----
    th_run = th
    while (
        _vmem_estimate(tm, th_run, Ep, out_bytes) > budget
        and th_run >= 256
        and (th_run // 2) % 128 == 0
        and Hp % (th_run // 2) == 0
    ):
        th_run //= 2
    while _vmem_estimate(tm, th_run, Ep, out_bytes) > budget and tm > 128:
        tm = max(128, _round_up(tm // 2, 8))

    Mp = _round_up(M, tm)
    n_row_tiles = Mp // tm
    n_h_tiles = Hp // th_run
    grid = (n_row_tiles, n_h_tiles)  # (rows: parallel, hidden: reduction/arbitrary)

    vmem_est = _vmem_estimate(tm, th_run, Ep, out_bytes)
    vmem_limit = int(min(max(32 * _MIB, int(1.5 * vmem_est)), budget))

    # Activations are padded/cast per call (they change every call anyway).
    x2d = jnp.pad(x.reshape(M, E), ((0, Mp - M), (0, Ep - E))).astype(jnp.bfloat16)

    cost = pl.CostEstimate(
        flops=4 * Mp * Ep * Hp,
        transcendentals=0,
        bytes_accessed=(
            x2d.size * 2
            + n_row_tiles * (w1p.size * 2 + w2p.size * 2 + b1p.size * 4)
            + b2p.size * 4
            + Mp * Ep * out_bytes
        ),
    )

    out2d = pl.pallas_call(
        _ffn_kernel,
        out_shape=jax.ShapeDtypeStruct((Mp, Ep), out_dtype),
        grid=grid,
        in_specs=[
            pl.BlockSpec((tm, Ep), lambda i, h: (i, 0)),      # x row tile
            pl.BlockSpec((Ep, th_run), lambda i, h: (0, h)),  # W1 slab
            pl.BlockSpec((1, th_run), lambda i, h: (0, h)),   # b1 slab
            pl.BlockSpec((th_run, Ep), lambda i, h: (h, 0)),  # W2 slab
            pl.BlockSpec((1, Ep), lambda i, h: (0, 0)),       # b2
        ],
        out_specs=pl.BlockSpec((tm, Ep), lambda i, h: (i, 0)),
        scratch_shapes=[pltpu.VMEM((tm, Ep), jnp.float32)],
        compiler_params=pltpu.CompilerParams(
            dimension_semantics=("parallel", "arbitrary"),
            vmem_limit_bytes=vmem_limit,
        ),
        cost_estimate=cost,
    )(x2d, w1p, b1p, w2p, b2p)

    return out2d[:M, :E].reshape(B, T, E)


def make_feed_forward(w1, b1, w2, b2):
    """Pad + cast the weights to bf16 ONCE (hoisted out of the per-call path)
    and return a jitted apply(x) closure.  Weights stored as (in, out)."""
    E, H = int(w1.shape[0]), int(w1.shape[1])
    b1 = jnp.reshape(b1, (1, H))
    b2 = jnp.reshape(b2, (1, E))

    Ep = _round_up(E, 128)
    big_vmem = _hw_vmem_bytes() >= 100 * _MIB
    target_th = 1024 if big_vmem else 512
    th = min(target_th, _round_up(H, 128))
    Hp = _round_up(H, th)

    # One-time pad + bf16 cast (zero padding is exact for this MLP).
    w1p = jnp.pad(w1, ((0, Ep - E), (0, Hp - H))).astype(jnp.bfloat16)
    b1p = jnp.pad(b1, ((0, 0), (0, Hp - H))).astype(jnp.float32)
    w2p = jnp.pad(w2, ((0, Hp - H), (0, Ep - E))).astype(jnp.bfloat16)
    b2p = jnp.pad(b2, ((0, 0), (0, Ep - E))).astype(jnp.float32)

    fn = jax.jit(functools.partial(_apply_impl, th=th))

    def apply(x):
        return fn(x, w1p, b1p, w2p, b2p)

    return apply


def feed_forward(x, w1, b1, w2, b2):
    """One-shot convenience. For repeated calls use make_feed_forward() so the
    padded bf16 weights are cached instead of re-cast every call."""
    return make_feed_forward(w1, b1, w2, b2)(x)


def init_params(key, num_embed):
    """Deterministic init matching PyTorch nn.Linear shapes:
    fc1: Linear(E, 4E), fc2: Linear(4E, E).  Stored as (in, out)."""
    hidden = 4 * num_embed
    k1, k2, k3, k4 = jax.random.split(key, 4)
    bound1 = 1.0 / jnp.sqrt(num_embed)
    bound2 = 1.0 / jnp.sqrt(hidden)
    w1 = jax.random.uniform(k1, (num_embed, hidden), jnp.float32, -bound1, bound1)
    b1 = jax.random.uniform(k2, (1, hidden), jnp.float32, -bound1, bound1)
    w2 = jax.random.uniform(k3, (hidden, num_embed), jnp.float32, -bound2, bound2)
    b2 = jax.random.uniform(k4, (1, num_embed), jnp.float32, -bound2, bound2)
    return w1, b1, w2, b2


if __name__ == "__main__":
    key = jax.random.PRNGKey(0)
    B, T, E = 2, 8, 32          # batch, seq, num_embed
    dropout = 0.1               # unused at inference (identity)

    kx, kp = jax.random.split(key)
    x = jax.random.normal(kx, (B, T, E), jnp.float32)
    w1, b1, w2, b2 = init_params(kp, E)

    ffn = make_feed_forward(w1, b1, w2, b2)   # weights padded / cast once
    out = ffn(x)
    out = jax.block_until_ready(out)

    # Reference in plain JAX with the same bf16-input / f32-accumulate recipe.
    f32 = jnp.float32
    xb = x.reshape(-1, E).astype(jnp.bfloat16).astype(f32)
    w1b = w1.astype(jnp.bfloat16).astype(f32)
    w2b = w2.astype(jnp.bfloat16).astype(f32)
    h = jnp.maximum(xb @ w1b + b1, 0.0).astype(jnp.bfloat16).astype(f32)
    ref = (h @ w2b + b2).reshape(B, T, E)

    assert out.shape == (B, T, E)
    assert jnp.allclose(out, ref, atol=2e-2, rtol=2e-2), float(jnp.max(jnp.abs(out - ref)))

    print("KERNEL_OK")
</pallas_src>

<mosaic_0001>
module attributes {stable_mosaic.version = 11 : i64} {
  func.func @_ffn_kernel(%arg0: i32, %arg1: i32, %arg2: memref<16x128xbf16, #tpu.memory_space<vmem>>, %arg3: memref<128x128xbf16, #tpu.memory_space<vmem>>, %arg4: memref<1x128xf32, #tpu.memory_space<vmem>>, %arg5: memref<128x128xbf16, #tpu.memory_space<vmem>>, %arg6: memref<1x128xf32, #tpu.memory_space<vmem>>, %arg7: memref<16x128xf32, #tpu.memory_space<vmem>>, %arg8: memref<16x128xf32, #tpu.memory_space<vmem>>) attributes {dimension_semantics = [#tpu.dimension_semantics<parallel>, #tpu.dimension_semantics<arbitrary>], iteration_bounds = array<i64: 1, 1>, scalar_prefetch = 0 : i64, scratch_operands = 1 : i64, tpu.core_type = #tpu.core_type<tc>, window_params = [{transform_indices = @transform_0, window_bounds = array<i64: 16, 128>}, {transform_indices = @transform_1, window_bounds = array<i64: 128, 128>}, {transform_indices = @transform_2, window_bounds = array<i64: 1, 128>}, {transform_indices = @transform_3, window_bounds = array<i64: 128, 128>}, {pipeline_mode = #tpu.pipeline_mode<synchronous>, transform_indices = @transform_4, window_bounds = array<i64: 1, 128>}, {transform_indices = @transform_5, window_bounds = array<i64: 16, 128>}]} {
    %c0_i32 = arith.constant 0 : i32
    %0 = arith.cmpi eq, %arg1, %c0_i32 : i32
    %1 = arith.extui %0 : i1 to i32
    %c0_i32_0 = arith.constant 0 : i32
    %2 = arith.cmpi ne, %1, %c0_i32_0 : i32
    scf.if %2 {
      %cst_16 = arith.constant 0.000000e+00 : f32
      %20 = vector.broadcast %cst_16 : f32 to vector<16x128xf32>
      %c0_17 = arith.constant 0 : index
      %c0_18 = arith.constant 0 : index
      %21 = vector.load %arg8[%c0_17, %c0_18] : memref<16x128xf32, #tpu.memory_space<vmem>>, vector<16x128xf32>
      tpu.vector_store %arg8[%c0_17, %c0_18], %20 {strides = array<i32>} : memref<16x128xf32, #tpu.memory_space<vmem>>, vector<16x128xf32>,
    } else {
    }
    %c0 = arith.constant 0 : index
    %c0_1 = arith.constant 0 : index
    %3 = vector.load %arg2[%c0, %c0_1] : memref<16x128xbf16, #tpu.memory_space<vmem>>, vector<16x128xbf16>
    %c0_2 = arith.constant 0 : index
    %c0_3 = arith.constant 0 : index
    %4 = vector.load %arg3[%c0_2, %c0_3] : memref<128x128xbf16, #tpu.memory_space<vmem>>, vector<128x128xbf16>
    %cst = arith.constant dense<0.000000e+00> : vector<16x128xf32>
    %5 = tpu.matmul %3, %4, %cst {dimension_numbers = #tpu.dot_dimension_numbers<[1], [0], [0], [1], [0, 0, 1, 1], [], []>} : vector<16x128xbf16>, vector<128x128xbf16>, vector<16x128xf32> -> vector<16x128xf32>
    %c0_4 = arith.constant 0 : index
    %c0_5 = arith.constant 0 : index
    %6 = vector.load %arg4[%c0_4, %c0_5] : memref<1x128xf32, #tpu.memory_space<vmem>>, vector<1x128xf32>
    %7 = vector.broadcast %6 : vector<1x128xf32> to vector<16x128xf32>
    %8 = arith.addf %5, %7 : vector<16x128xf32>
    %cst_6 = arith.constant 0.000000e+00 : f32
    %9 = vector.broadcast %cst_6 : f32 to vector<16x128xf32>
    %10 = arith.maximumf %8, %9 : vector<16x128xf32>
    %c0_7 = arith.constant 0 : index
    %c0_8 = arith.constant 0 : index
    %11 = vector.load %arg8[%c0_7, %c0_8] : memref<16x128xf32, #tpu.memory_space<vmem>>, vector<16x128xf32>
    %12 = arith.truncf %10 : vector<16x128xf32> to vector<16x128xbf16>
    %c0_9 = arith.constant 0 : index
    %c0_10 = arith.constant 0 : index
    %13 = vector.load %arg5[%c0_9, %c0_10] : memref<128x128xbf16, #tpu.memory_space<vmem>>, vector<128x128xbf16>
    %cst_11 = arith.constant dense<0.000000e+00> : vector<16x128xf32>
    %14 = tpu.matmul %12, %13, %cst_11 {dimension_numbers = #tpu.dot_dimension_numbers<[1], [0], [0], [1], [0, 0, 1, 1], [], []>} : vector<16x128xbf16>, vector<128x128xbf16>, vector<16x128xf32> -> vector<16x128xf32>
    %15 = arith.addf %11, %14 : vector<16x128xf32>
    %c0_12 = arith.constant 0 : index
    %c0_13 = arith.constant 0 : index
    %16 = vector.load %arg8[%c0_12, %c0_13] : memref<16x128xf32, #tpu.memory_space<vmem>>, vector<16x128xf32>
    tpu.vector_store %arg8[%c0_12, %c0_13], %15 {strides = array<i32>} : memref<16x128xf32, #tpu.memory_space<vmem>>, vector<16x128xf32>,
    %c0_i32_14 = arith.constant 0 : i32
    %17 = arith.cmpi eq, %arg1, %c0_i32_14 : i32
    %18 = arith.extui %17 : i1 to i32
    %c0_i32_15 = arith.constant 0 : i32
    %19 = arith.cmpi ne, %18, %c0_i32_15 : i32
    scf.if %19 {
      %c0_16 = arith.constant 0 : index
      %c0_17 = arith.constant 0 : index
      %20 = vector.load %arg8[%c0_16, %c0_17] : memref<16x128xf32, #tpu.memory_space<vmem>>, vector<16x128xf32>
      %c0_18 = arith.constant 0 : index
      %c0_19 = arith.constant 0 : index
      %21 = vector.load %arg6[%c0_18, %c0_19] : memref<1x128xf32, #tpu.memory_space<vmem>>, vector<1x128xf32>
      %22 = vector.broadcast %21 : vector<1x128xf32> to vector<16x128xf32>
      %23 = arith.addf %20, %22 : vector<16x128xf32>
      %c0_20 = arith.constant 0 : index
      %c0_21 = arith.constant 0 : index
      %24 = vector.load %arg7[%c0_20, %c0_21] : memref<16x128xf32, #tpu.memory_space<vmem>>, vector<16x128xf32>
      tpu.vector_store %arg7[%c0_20, %c0_21], %23 {strides = array<i32>} : memref<16x128xf32, #tpu.memory_space<vmem>>, vector<16x128xf32>,
    } else {
    }
    return
  }
  func.func @transform_0(%arg0: i32, %arg1: i32) -> (i32, i32) {
    %c0_i32 = arith.constant 0 : i32
    %c0_i32_0 = arith.constant 0 : i32
    return %arg0, %c0_i32 : i32, i32
  }
  func.func @transform_1(%arg0: i32, %arg1: i32) -> (i32, i32) {
    %c0_i32 = arith.constant 0 : i32
    %c0_i32_0 = arith.constant 0 : i32
    return %c0_i32, %arg1 : i32, i32
  }
  func.func @transform_2(%arg0: i32, %arg1: i32) -> (i32, i32) {
    %c0_i32 = arith.constant 0 : i32
    %c0_i32_0 = arith.constant 0 : i32
    return %c0_i32, %arg1 : i32, i32
  }
  func.func @transform_3(%arg0: i32, %arg1: i32) -> (i32, i32) {
    %c0_i32 = arith.constant 0 : i32
    %c0_i32_0 = arith.constant 0 : i32
    return %arg1, %c0_i32 : i32, i32
  }
  func.func @transform_4(%arg0: i32, %arg1: i32) -> (i32, i32) {
    %c0_i32 = arith.constant 0 : i32
    %c0_i32_0 = arith.constant 0 : i32
    %c0_i32_1 = arith.constant 0 : i32
    return %c0_i32, %c0_i32_0 : i32, i32
  }
  func.func @transform_5(%arg0: i32, %arg1: i32) -> (i32, i32) {
    %c0_i32 = arith.constant 0 : i32
    %c0_i32_0 = arith.constant 0 : i32
    return %arg0, %c0_i32 : i32, i32
  }
}

</mosaic_0001>

<bundles_post_ra>
// kernel: _apply_impl.1
= control target key start
LH: loop header
LB: loop body
LE: loop exit
PB: predicated region body
PF: predicated region fallthrough
CT: control target
= control target key end

     0   :  { %10 = vsyncpa [#allocation4], 0  ;;  %s534_s0 = inlined_call_operand.vmem [shape: bf16[16,128], index: 0, kind: input, shape index: {}]   ;;  %s535_s1 = inlined_call_operand.hbm [shape: bf16[128,128], index: 1, kind: input, shape index: {}]   ;;  %s536_s2 = inlined_call_operand.vmem [shape: f32[1,128], index: 2, kind: input, shape index: {}]   ;;  %s537_s3 = inlined_call_operand.hbm [shape: bf16[128,128], index: 3, kind: input, shape index: {}]   ;;  %s538_s4 = inlined_call_operand.vmem [shape: f32[1,128], index: 4, kind: input, shape index: {}]   ;;  %s539_s5 = inlined_call_operand.vmem [shape: f32[16,128], index: 5, kind: output, shape index: {}]  }
   0x1   :  { %11 = vsyncpa [#allocation6], 0  ;;  %s459_s18 = smov [#allocation3]   ;;  %s411_s22 = scalar_lea.hbm %s535_s1, 1024 }
   0x2   :  { %s19_s19 = sshll.u32 %s459_s18, 4  ;;  %p412_p0 = scmp.ne.s32.totalorder %s535_s1, %s411_s22  ;;  %s20_s19 = int_to_ptr.vmem [resolvable:$true] %s19_s19 }
   0x3   :  { %p415_p1 = scmp.lt.u32.totalorder %s411_s22, %s535_s1 }
   0x5   :  { %p417_p2 = pnand %p415_p1, %p412_p0 }
   0x7   :  { %420 = shalt.err (!%p417_p2)
}
   0x8   :  { %s421_s27 = scalar_lea.vmem %s20_s19, 1024  ;;  %p426_p4 = scmp.lt.s32.totalorder %s20_s19, %s20_s19 }
   0x9   :  { %p422_p3 = scmp.ne.s32.totalorder %s20_s19, %s421_s27  ;;  %p427_p5 = scmp.lt.s32.totalorder %s421_s27, %s421_s27 }
   0xb   :  { %p428_p6 = por %p427_p5, %p426_p4 }
   0xd   :  { %p429_p7 = pnand %p428_p6, %p422_p3 }
   0xf   :  { %432 = shalt.err (!%p429_p7)
}
  0x10   :  { %s460_s28 = smov 64   ;;  %s461_s29 = smov 4  }
  0x11   :  { %25 = dma.hbm_to_vmem [thread:$0]  %s535_s1, 1024, %s20_s19, [#allocation4], %s460_s28, %s460_s28, %s461_s29  }
  0x12   :  { %s462_s7 = smov [#allocation5]   ;;  %s433_s11 = scalar_lea.hbm %s537_s3, 1024 }
  0x13   :  { %s33_s8 = sshll.u32 %s462_s7, 4  ;;  %p434_p8 = scmp.ne.s32.totalorder %s537_s3, %s433_s11  ;;  %s34_s8 = int_to_ptr.vmem [resolvable:$true] %s33_s8 }
  0x14   :  { %p437_p9 = scmp.lt.u32.totalorder %s433_s11, %s537_s3 }
  0x16   :  { %p439_p10 = pnand %p437_p9, %p434_p8 }
  0x18   :  { %442 = shalt.err (!%p439_p10)
}
  0x19   :  { %s443_s16 = scalar_lea.vmem %s34_s8, 1024  ;;  %p448_p12 = scmp.lt.s32.totalorder %s34_s8, %s34_s8 }
  0x1a   :  { %p444_p11 = scmp.ne.s32.totalorder %s34_s8, %s443_s16  ;;  %p449_p13 = scmp.lt.s32.totalorder %s443_s16, %s443_s16 }
  0x1c   :  { %p450_p0 = por %p449_p13, %p448_p12 }
  0x1e   :  { %p451_p1 = pnand %p450_p0, %p444_p11 }
  0x20   :  { %454 = shalt.err (!%p451_p1)
}
  0x21   :  { %39 = dma.hbm_to_vmem [thread:$0]  %s537_s3, 1024, %s34_s8, [#allocation6], %s460_s28, %s460_s28, %s461_s29  }
  0x22   :  { %455 = dma.done.wait [#allocation4], 1024  }
  0x23   :  { %456 = vsyncadd [#allocation4], 4294966272 }
  0x24   :  { %457 = dma.done.wait [#allocation6], 1024  }
  0x25   :  { %458 = vsyncadd [#allocation6], 4294966272  ;;  %v463_v0 = vmov 0.0   ;;  %vm464_vm0 = vmmov 0   ;;  %v394_v1 = vld [vmem:[#allocation3] sm:$0xff]   ;;  %v395_v2 = vld [vmem:[#allocation3 + $0x8] sm:$0xff]  }
  0x26   :  { %348 = vmatprep.subr.bf16.mxu0 %v463_v0  ;;  %364 = vmatprep.mubr.msk.bf16.mxu0 %vm464_vm0, %v463_v0  ;;  %v396_v3 = vld [vmem:[#allocation3 + $0x10] sm:$0xff]   ;;  %v403_v4 = vld [vmem:[#allocation5] sm:$0xff]   ;;  %v397_v5 = vld [vmem:[#allocation3 + $0x18] sm:$0xff]  }
  0x27   :  { %368 = vmatprep.subr.bf16.mxu1 %v463_v0  ;;  %384 = vmatprep.mubr.msk.bf16.mxu1 %vm464_vm0, %v463_v0  ;;  %v404_v6 = vld [vmem:[#allocation5 + $0x8] sm:$0xff]   ;;  %v398_v7 = vld [vmem:[#allocation3 + $0x20] sm:$0xff]   ;;  %v405_v8 = vld [vmem:[#allocation5 + $0x10] sm:$0xff]  }
  0x28   :  { %349 = vmatpush3.bf16.msra.mxu0 %v394_v1  ;;  %369 = vmatpush3.bf16.msra.mxu1 %v403_v4  ;;  %v399_v9 = vld [vmem:[#allocation3 + $0x28] sm:$0xff]   ;;  %v406_v10 = vld [vmem:[#allocation5 + $0x18] sm:$0xff]   ;;  %v400_v11 = vld [vmem:[#allocation3 + $0x30] sm:$0xff]  }
  0x29   :  { %350 = vmatprep.subr.bf16.mxu0 %v463_v0  ;;  %370 = vmatprep.subr.bf16.mxu1 %v463_v0  ;;  %v407_v12 = vld [vmem:[#allocation5 + $0x20] sm:$0xff]   ;;  %v401_v13 = vld [vmem:[#allocation3 + $0x38] sm:$0xff]   ;;  %v408_v14 = vld [vmem:[#allocation5 + $0x28] sm:$0xff]  }
  0x2a   :  { %v402_v15 = vld [vmem:[%s534_s0] sm:$0xff]   ;;  %v409_v16 = vld [vmem:[#allocation5 + $0x30] sm:$0xff]   ;;  %v410_v17 = vld [vmem:[#allocation5 + $0x38] sm:$0xff]  }
  0x2b   :  { %v311_v18 = vld [vmem:[%s536_s2] ss:$0 sm:$0xff] }
  0x2c   :  { %351 = vmatpush3.bf16.msra.mxu0 %v395_v2  ;;  %371 = vmatpush3.bf16.msra.mxu1 %v404_v6  ;;  %v329_v28 = vld [vmem:[%s538_s4] ss:$0 sm:$0xff] }
  0x2d   :  { %352 = vmatprep.subr.bf16.mxu0 %v463_v0  ;;  %372 = vmatprep.subr.bf16.mxu1 %v463_v0 }
  0x30   :  { %353 = vmatpush3.bf16.msra.mxu0 %v396_v3  ;;  %373 = vmatpush3.bf16.msra.mxu1 %v405_v8 }
  0x31   :  { %354 = vmatprep.subr.bf16.mxu0 %v463_v0  ;;  %374 = vmatprep.subr.bf16.mxu1 %v463_v0 }
  0x34   :  { %355 = vmatpush3.bf16.msra.mxu0 %v397_v5  ;;  %375 = vmatpush3.bf16.msra.mxu1 %v406_v10 }
  0x35   :  { %356 = vmatprep.subr.bf16.mxu0 %v463_v0  ;;  %376 = vmatprep.subr.bf16.mxu1 %v463_v0 }
  0x38   :  { %357 = vmatpush3.bf16.msra.mxu0 %v398_v7  ;;  %377 = vmatpush3.bf16.msra.mxu1 %v407_v12 }
  0x39   :  { %358 = vmatprep.subr.bf16.mxu0 %v463_v0  ;;  %378 = vmatprep.subr.bf16.mxu1 %v463_v0 }
  0x3c   :  { %359 = vmatpush3.bf16.msra.mxu0 %v399_v9  ;;  %379 = vmatpush3.bf16.msra.mxu1 %v408_v14 }
  0x3d   :  { %360 = vmatprep.subr.bf16.mxu0 %v463_v0  ;;  %380 = vmatprep.subr.bf16.mxu1 %v463_v0 }
  0x40   :  { %361 = vmatpush3.bf16.msra.mxu0 %v400_v11  ;;  %381 = vmatpush3.bf16.msra.mxu1 %v409_v16 }
  0x41   :  { %362 = vmatprep.subr.bf16.mxu0 %v463_v0  ;;  %382 = vmatprep.subr.bf16.mxu1 %v463_v0 }
  0x44   :  { %363 = vmatpush3.bf16.msra.mxu0 %v401_v13  ;;  %383 = vmatpush3.bf16.msra.mxu1 %v410_v17 }
  0x47   :  { %365 = vmatmul.mubr.bf16.vlgmr.msra.gmra.mrb[0].mxu0 %v402_v15 }
 0x11a   :  { %v168_v19 = vpop.f32.mrb[0].mxu0 }
 0x11b   :  { %v169_v20 = vadd.f32 %v311_v18, %v168_v19  ;;  %v366_v21 = vpop.f32.mrb[1].mxu0 }
 0x11c   :  { %v171_v22 = vpop.f32.mrb[2].mxu0 }
 0x11d   :  { %v172_v23 = vadd.f32 %v311_v18, %v171_v22  ;;  %v367_v24 = vpop.f32.mrb[3].mxu0  ;;  %v175_v25 = vmax.f32 %v169_v20, 0.0 }
 0x11f   :  { %v176_v26 = vmax.f32 %v172_v23, 0.0 }
 0x121   :  { %v179_v27 = vpack.c.bf16 %v176_v26, %v175_v25 }
 0x123   :  { %385 = vmatmul.mubr.bf16.vlgmr.msra.gmra.mrb[0].mxu1 %v179_v27 }
 0x1f6   :  { %v278_v29 = vpop.f32.mrb[0].mxu1 }
 0x1f7   :  { %v301_v30 = vadd.f32 %v329_v28, %v278_v29  ;;  %v386_v31 = vpop.f32.mrb[1].mxu1 }
 0x1f8   :  { %v281_v32 = vpop.f32.mrb[2].mxu1 }
 0x1f9   :  { %303 = vst [vmem:[%s539_s5] sm:$0xff] %v301_v30  ;;  %v302_v33 = vadd.f32 %v329_v28, %v281_v32  ;;  %v387_v34 = vpop.f32.mrb[3].mxu1 }
 0x1fb   :  { %304 = vst [vmem:[%s539_s5 + $0x8] sm:$0xff] %v302_v33 }
 0x1fc   :  { %309 = vsyncpa [#allocation4], 1 }
 0x1fd   :  { %310 = vsyncpa [#allocation6], 1 }

</bundles_post_ra>
